<compile_context>
chip_gen: v7x
topology: tpu7x:2x2x1
jax: 0.10.0
libtpu: 0.0.40
codegen_flags: <defaults>
</compile_context>

<pallas_src>
import functools
import math

import jax
import jax.numpy as jnp
from jax import lax
from jax.experimental import pallas as pl
from jax.experimental.pallas import tpu as pltpu


# ----------------------------------------------------------------------------
# Fused forward kernel: a chain of (matmul + bias + tanh) over batch columns.
# Ref order: x, (w, b) * (n_conv + n_fc), out.   All weights are (F_out, F_in).
# ----------------------------------------------------------------------------
def _make_fused_kernel(n_layers):
    def kernel(*refs):
        x_ref = refs[0]
        w_refs = refs[1:1 + 2 * n_layers]
        o_ref = refs[-1]

        act = x_ref[...].astype(jnp.bfloat16)                 # (F0, B_blk)
        for i in range(n_layers):
            w_ref = w_refs[2 * i]                             # (F_out, F_in) bf16
            b_ref = w_refs[2 * i + 1]                         # (F_out, 1)    f32
            h = jnp.dot(w_ref[...], act,
                        preferred_element_type=jnp.float32)   # (F_out, B_blk)
            h = h + b_ref[...]
            if i < n_layers - 1:                              # tanh on all but last
                act = jnp.tanh(h).astype(jnp.bfloat16)
            else:
                o_ref[...] = h.astype(o_ref.dtype)

    return kernel


def _const_index_map(ndim):
    return lambda bi: (0,) * ndim


# ----------------------------------------------------------------------------
# Trace-time conv -> Toeplitz weight fold (valid conv, given stride).
# W_toep[co*l_out + lo, ci*l_in + li] = w[co, ci, k]  iff  li == lo*stride + k.
# ----------------------------------------------------------------------------
def _build_toeplitz(w, l_in, l_out, stride):
    cout, cin, K = w.shape
    li = jnp.arange(l_in)[None, :, None]                      # (1, l_in, 1)
    lo = jnp.arange(l_out)[None, None, :]                     # (1, 1, l_out)
    kk = jnp.arange(K)[:, None, None]                         # (K, 1, 1)
    sel = (li == lo * stride + kk).astype(w.dtype)            # (K, l_in, l_out)
    w4 = jnp.einsum("oik,kjl->olij", w, sel)                  # (cout, l_out, cin, l_in)
    return w4.reshape(cout * l_out, cin * l_in)


# ----------------------------------------------------------------------------
# Wrapper: weight re-layout + single pallas_call over batch blocks (in lanes).
# ----------------------------------------------------------------------------
def cnnet1d_forward(params, x, kernel_size: int, stride: int):
    """x: (B, conv_arch[0], m_size) f32 -> (B, fc_arch[-1]) f32."""
    B, cin, L = x.shape
    n_conv = len(params["conv"])
    n_fc = len(params["fc"])
    assert n_fc >= 1

    # ---- Trace-time weight re-layout (all layers become (F_out, F_in) bf16) ----
    layer_ws, layer_bs = [], []
    c, l = cin, L
    for (w, b) in params["conv"]:
        cout = w.shape[0]
        l_out = (l - kernel_size) // stride + 1
        layer_ws.append(_build_toeplitz(w, l, l_out, stride).astype(jnp.bfloat16))
        layer_bs.append(jnp.broadcast_to(b[:, None], (cout, l_out))
                        .reshape(cout * l_out, 1).astype(jnp.float32))
        c, l = cout, l_out
    flat_feat = c * l                                          # PyTorch NCL flatten size
    for j, (w, b) in enumerate(params["fc"]):
        f_out, f_in = w.shape
        if j == 0:
            assert f_in == flat_feat, (f_in, flat_feat)
        layer_ws.append(w.astype(jnp.bfloat16))                # (f_out, f_in): no transpose
        layer_bs.append(b.reshape(f_out, 1).astype(jnp.float32))
    f_last = params["fc"][-1][0].shape[0]
    n_layers = n_conv + n_fc

    weight_inputs = []
    for w_, b_ in zip(layer_ws, layer_bs):
        weight_inputs.extend([w_, b_])

    # ---- Batch-in-lanes input layout: (cin*L, B) padded to a lane-block multiple ----
    F0 = cin * L
    B_blk = 128 if B <= 128 else 256                           # 128 (v5e) / 256 (v6e/v7x)
    n_blocks = -(-B // B_blk)
    B_pad = n_blocks * B_blk
    xt = x.reshape(B, F0).T                                    # (F0, B)
    if B_pad != B:
        xt = jnp.pad(xt, ((0, 0), (0, B_pad - B)))

    kernel = _make_fused_kernel(n_layers)

    in_specs = [pl.BlockSpec((F0, B_blk), lambda bi: (0, bi))]
    for arr in weight_inputs:                                  # VMEM-resident weights
        in_specs.append(pl.BlockSpec(arr.shape, _const_index_map(arr.ndim)))

    out = pl.pallas_call(
        kernel,
        out_shape=jax.ShapeDtypeStruct((f_last, B_pad), jnp.float32),
        grid_spec=pltpu.PrefetchScalarGridSpec(
            num_scalar_prefetch=0,
            grid=(n_blocks,),
            in_specs=in_specs,
            out_specs=pl.BlockSpec((f_last, B_blk), lambda bi: (0, bi)),
        ),
        compiler_params=pltpu.CompilerParams(
            dimension_semantics=("parallel",)),
    )(xt, *weight_inputs)
    return out.T[:B]                                           # (B, f_last)


# ----------------------------------------------------------------------------
# Deterministic PyTorch-default-style parameter init.
# ----------------------------------------------------------------------------
def init_params(key, conv_arch, fc_arch, kernel_size):
    params = {"conv": [], "fc": []}
    cin = conv_arch[0]
    for cout in conv_arch[1:]:
        key, k1, k2 = jax.random.split(key, 3)
        bound = 1.0 / math.sqrt(cin * kernel_size)
        w = jax.random.uniform(k1, (cout, cin, kernel_size), jnp.float32, -bound, bound)
        b = jax.random.uniform(k2, (cout,), jnp.float32, -bound, bound)
        params["conv"].append((w, b))
        cin = cout
    fin = fc_arch[0]
    for fout in fc_arch[1:]:
        key, k1, k2 = jax.random.split(key, 3)
        bound = 1.0 / math.sqrt(fin)
        w = jax.random.uniform(k1, (fout, fin), jnp.float32, -bound, bound)
        b = jax.random.uniform(k2, (fout,), jnp.float32, -bound, bound)
        params["fc"].append((w, b))
        fin = fout
    return params


if __name__ == "__main__":
    # input x: (batch=2, conv_arch[0]=4, m_size=64); kernel=5, stride=3
    # L: 64 -> 20 -> 6; flatten = 16*6 = 96; fc_arch = [96, 32, 8]
    batch, cin, length = 2, 4, 64
    kernel_size, stride = 5, 3
    conv_arch = [cin, 8, 16]
    l1 = (length - kernel_size) // stride + 1
    l2 = (l1 - kernel_size) // stride + 1
    fc_arch = [conv_arch[-1] * l2, 32, 8]

    key = jax.random.PRNGKey(0)
    key, kx = jax.random.split(key)
    x = jax.random.normal(kx, (batch, cin, length), jnp.float32)
    params = init_params(key, conv_arch, fc_arch, kernel_size)

    fwd = jax.jit(functools.partial(cnnet1d_forward,
                                    kernel_size=kernel_size, stride=stride))
    out = jax.block_until_ready(fwd(params, x))
    assert out.shape == (batch, fc_arch[-1]), out.shape

    # Pure-JAX reference of the same math, mirroring the kernel's numerics
    # (bf16 matmul operands, f32 accumulation, f32 bias/tanh).
    def ref_forward(params, x):
        for w, b in params["conv"]:
            y = lax.conv_general_dilated(
                x.astype(jnp.bfloat16), w.astype(jnp.bfloat16),
                window_strides=(stride,), padding="VALID",
                dimension_numbers=("NCH", "OIH", "NCH"),
                preferred_element_type=jnp.float32)
            x = jnp.tanh(y + b[None, :, None])
        x = x.reshape(x.shape[0], -1)
        n_fc = len(params["fc"])
        for i, (w, b) in enumerate(params["fc"]):
            x = jnp.dot(x.astype(jnp.bfloat16), w.astype(jnp.bfloat16).T,
                        preferred_element_type=jnp.float32) + b
            if i < n_fc - 1:
                x = jnp.tanh(x)
        return x

    ref = ref_forward(params, x)
    assert jnp.allclose(out, ref, atol=2e-2, rtol=2e-2), \
        float(jnp.max(jnp.abs(out - ref)))

    print("KERNEL_OK")
</pallas_src>

<mosaic_0001>
module attributes {stable_mosaic.version = 11 : i64} {
  func.func @kernel(%arg0: i32, %arg1: memref<256x128xf32, #tpu.memory_space<vmem>>, %arg2: memref<160x256xbf16, #tpu.memory_space<vmem>>, %arg3: memref<160x1xf32, #tpu.memory_space<vmem>>, %arg4: memref<96x160xbf16, #tpu.memory_space<vmem>>, %arg5: memref<96x1xf32, #tpu.memory_space<vmem>>, %arg6: memref<32x96xbf16, #tpu.memory_space<vmem>>, %arg7: memref<32x1xf32, #tpu.memory_space<vmem>>, %arg8: memref<8x32xbf16, #tpu.memory_space<vmem>>, %arg9: memref<8x1xf32, #tpu.memory_space<vmem>>, %arg10: memref<8x128xf32, #tpu.memory_space<vmem>>) attributes {dimension_semantics = [#tpu.dimension_semantics<parallel>], iteration_bounds = array<i64: 1>, scalar_prefetch = 0 : i64, scratch_operands = 0 : i64, tpu.core_type = #tpu.core_type<tc>, window_params = [{transform_indices = @transform_0, window_bounds = array<i64: 256, 128>}, {pipeline_mode = #tpu.pipeline_mode<synchronous>, transform_indices = @transform_1, window_bounds = array<i64: 160, 256>}, {pipeline_mode = #tpu.pipeline_mode<synchronous>, transform_indices = @transform_2, window_bounds = array<i64: 160, 1>}, {pipeline_mode = #tpu.pipeline_mode<synchronous>, transform_indices = @transform_3, window_bounds = array<i64: 96, 160>}, {pipeline_mode = #tpu.pipeline_mode<synchronous>, transform_indices = @transform_4, window_bounds = array<i64: 96, 1>}, {pipeline_mode = #tpu.pipeline_mode<synchronous>, transform_indices = @transform_5, window_bounds = array<i64: 32, 96>}, {pipeline_mode = #tpu.pipeline_mode<synchronous>, transform_indices = @transform_6, window_bounds = array<i64: 32, 1>}, {pipeline_mode = #tpu.pipeline_mode<synchronous>, transform_indices = @transform_7, window_bounds = array<i64: 8, 32>}, {pipeline_mode = #tpu.pipeline_mode<synchronous>, transform_indices = @transform_8, window_bounds = array<i64: 8, 1>}, {transform_indices = @transform_9, window_bounds = array<i64: 8, 128>}]} {
    %c0 = arith.constant 0 : index
    %c0_0 = arith.constant 0 : index
    %0 = vector.load %arg1[%c0, %c0_0] : memref<256x128xf32, #tpu.memory_space<vmem>>, vector<256x128xf32>
    %1 = arith.truncf %0 : vector<256x128xf32> to vector<256x128xbf16>
    %c0_1 = arith.constant 0 : index
    %c0_2 = arith.constant 0 : index
    %2 = vector.load %arg2[%c0_1, %c0_2] : memref<160x256xbf16, #tpu.memory_space<vmem>>, vector<160x256xbf16>
    %cst = arith.constant dense<0.000000e+00> : vector<160x128xf32>
    %3 = tpu.matmul %2, %1, %cst {dimension_numbers = #tpu.dot_dimension_numbers<[1], [0], [0], [1], [0, 0, 1, 1], [], []>} : vector<160x256xbf16>, vector<256x128xbf16>, vector<160x128xf32> -> vector<160x128xf32>
    %c0_3 = arith.constant 0 : index
    %c0_4 = arith.constant 0 : index
    %4 = vector.load %arg3[%c0_3, %c0_4] : memref<160x1xf32, #tpu.memory_space<vmem>>, vector<160x1xf32>
    %5 = vector.broadcast %4 : vector<160x1xf32> to vector<160x128xf32>
    %6 = arith.addf %3, %5 : vector<160x128xf32>
    %7 = math.tanh %6 : vector<160x128xf32>
    %8 = arith.truncf %7 : vector<160x128xf32> to vector<160x128xbf16>
    %c0_5 = arith.constant 0 : index
    %c0_6 = arith.constant 0 : index
    %9 = vector.load %arg4[%c0_5, %c0_6] : memref<96x160xbf16, #tpu.memory_space<vmem>>, vector<96x160xbf16>
    %cst_7 = arith.constant dense<0.000000e+00> : vector<96x128xf32>
    %10 = tpu.matmul %9, %8, %cst_7 {dimension_numbers = #tpu.dot_dimension_numbers<[1], [0], [0], [1], [0, 0, 1, 1], [], []>} : vector<96x160xbf16>, vector<160x128xbf16>, vector<96x128xf32> -> vector<96x128xf32>
    %c0_8 = arith.constant 0 : index
    %c0_9 = arith.constant 0 : index
    %11 = vector.load %arg5[%c0_8, %c0_9] : memref<96x1xf32, #tpu.memory_space<vmem>>, vector<96x1xf32>
    %12 = vector.broadcast %11 : vector<96x1xf32> to vector<96x128xf32>
    %13 = arith.addf %10, %12 : vector<96x128xf32>
    %14 = math.tanh %13 : vector<96x128xf32>
    %15 = arith.truncf %14 : vector<96x128xf32> to vector<96x128xbf16>
    %c0_10 = arith.constant 0 : index
    %c0_11 = arith.constant 0 : index
    %16 = vector.load %arg6[%c0_10, %c0_11] : memref<32x96xbf16, #tpu.memory_space<vmem>>, vector<32x96xbf16>
    %cst_12 = arith.constant dense<0.000000e+00> : vector<32x128xf32>
    %17 = tpu.matmul %16, %15, %cst_12 {dimension_numbers = #tpu.dot_dimension_numbers<[1], [0], [0], [1], [0, 0, 1, 1], [], []>} : vector<32x96xbf16>, vector<96x128xbf16>, vector<32x128xf32> -> vector<32x128xf32>
    %c0_13 = arith.constant 0 : index
    %c0_14 = arith.constant 0 : index
    %18 = vector.load %arg7[%c0_13, %c0_14] : memref<32x1xf32, #tpu.memory_space<vmem>>, vector<32x1xf32>
    %19 = vector.broadcast %18 : vector<32x1xf32> to vector<32x128xf32>
    %20 = arith.addf %17, %19 : vector<32x128xf32>
    %21 = math.tanh %20 : vector<32x128xf32>
    %22 = arith.truncf %21 : vector<32x128xf32> to vector<32x128xbf16>
    %c0_15 = arith.constant 0 : index
    %c0_16 = arith.constant 0 : index
    %23 = vector.load %arg8[%c0_15, %c0_16] : memref<8x32xbf16, #tpu.memory_space<vmem>>, vector<8x32xbf16>
    %cst_17 = arith.constant dense<0.000000e+00> : vector<8x128xf32>
    %24 = tpu.matmul %23, %22, %cst_17 {dimension_numbers = #tpu.dot_dimension_numbers<[1], [0], [0], [1], [0, 0, 1, 1], [], []>} : vector<8x32xbf16>, vector<32x128xbf16>, vector<8x128xf32> -> vector<8x128xf32>
    %c0_18 = arith.constant 0 : index
    %c0_19 = arith.constant 0 : index
    %25 = vector.load %arg9[%c0_18, %c0_19] : memref<8x1xf32, #tpu.memory_space<vmem>>, vector<8x1xf32>
    %26 = vector.broadcast %25 : vector<8x1xf32> to vector<8x128xf32>
    %27 = arith.addf %24, %26 : vector<8x128xf32>
    %c0_20 = arith.constant 0 : index
    %c0_21 = arith.constant 0 : index
    %28 = vector.load %arg10[%c0_20, %c0_21] : memref<8x128xf32, #tpu.memory_space<vmem>>, vector<8x128xf32>
    tpu.vector_store %arg10[%c0_20, %c0_21], %27 {strides = array<i32>} : memref<8x128xf32, #tpu.memory_space<vmem>>, vector<8x128xf32>,
    return
  }
  func.func @transform_0(%arg0: i32) -> (i32, i32) {
    %c0_i32 = arith.constant 0 : i32
    %c0_i32_0 = arith.constant 0 : i32
    return %c0_i32, %arg0 : i32, i32
  }
  func.func @transform_1(%arg0: i32) -> (i32, i32) {
    %c0_i32 = arith.constant 0 : i32
    %c0_i32_0 = arith.constant 0 : i32
    %c0_i32_1 = arith.constant 0 : i32
    return %c0_i32, %c0_i32_0 : i32, i32
  }
  func.func @transform_2(%arg0: i32) -> (i32, i32) {
    %c0_i32 = arith.constant 0 : i32
    %c0_i32_0 = arith.constant 0 : i32
    %c0_i32_1 = arith.constant 0 : i32
    return %c0_i32, %c0_i32_0 : i32, i32
  }
  func.func @transform_3(%arg0: i32) -> (i32, i32) {
    %c0_i32 = arith.constant 0 : i32
    %c0_i32_0 = arith.constant 0 : i32
    %c0_i32_1 = arith.constant 0 : i32
    return %c0_i32, %c0_i32_0 : i32, i32
  }
  func.func @transform_4(%arg0: i32) -> (i32, i32) {
    %c0_i32 = arith.constant 0 : i32
    %c0_i32_0 = arith.constant 0 : i32
    %c0_i32_1 = arith.constant 0 : i32
    return %c0_i32, %c0_i32_0 : i32, i32
  }
  func.func @transform_5(%arg0: i32) -> (i32, i32) {
    %c0_i32 = arith.constant 0 : i32
    %c0_i32_0 = arith.constant 0 : i32
    %c0_i32_1 = arith.constant 0 : i32
    return %c0_i32, %c0_i32_0 : i32, i32
  }
  func.func @transform_6(%arg0: i32) -> (i32, i32) {
    %c0_i32 = arith.constant 0 : i32
    %c0_i32_0 = arith.constant 0 : i32
    %c0_i32_1 = arith.constant 0 : i32
    return %c0_i32, %c0_i32_0 : i32, i32
  }
  func.func @transform_7(%arg0: i32) -> (i32, i32) {
    %c0_i32 = arith.constant 0 : i32
    %c0_i32_0 = arith.constant 0 : i32
    %c0_i32_1 = arith.constant 0 : i32
    return %c0_i32, %c0_i32_0 : i32, i32
  }
  func.func @transform_8(%arg0: i32) -> (i32, i32) {
    %c0_i32 = arith.constant 0 : i32
    %c0_i32_0 = arith.constant 0 : i32
    %c0_i32_1 = arith.constant 0 : i32
    return %c0_i32, %c0_i32_0 : i32, i32
  }
  func.func @transform_9(%arg0: i32) -> (i32, i32) {
    %c0_i32 = arith.constant 0 : i32
    %c0_i32_0 = arith.constant 0 : i32
    return %c0_i32, %arg0 : i32, i32
  }
}

</mosaic_0001>

<bundles_post_ra>
// kernel: cnnet1d_forward.1
= control target key start
LH: loop header
LB: loop body
LE: loop exit
PB: predicated region body
PF: predicated region fallthrough
CT: control target
= control target key end

     0   :  { %v1156_v3 = vmov 0   ;;  %vm602_vm0 = vcmask 261120   ;;  %vm758_vm1 = vcmask 785408   ;;  %vm1158_vm2 = vmmov 0   ;;  %s1545_s0 = inlined_call_operand.vmem [shape: f32[256,128], index: 0, kind: input, shape index: {}]   ;;  %s1546_s1 = inlined_call_operand.vmem [shape: bf16[160,256], index: 1, kind: input, shape index: {}]   ;;  %s1547_s2 = inlined_call_operand.vmem [shape: f32[160,1], index: 2, kind: input, shape index: {}]   ;;  %s1548_s4 = inlined_call_operand.vmem [shape: f32[96,1], index: 4, kind: input, shape index: {}]   ;;  %s1549_s6 = inlined_call_operand.vmem [shape: f32[32,1], index: 6, kind: input, shape index: {}]   ;;  %s1550_s8 = inlined_call_operand.vmem [shape: f32[8,1], index: 8, kind: input, shape index: {}]   ;;  %s1551_s3 = inlined_call_operand.vmem [shape: bf16[96,160], index: 3, kind: input, shape index: {}]   ;;  %s1552_s5 = inlined_call_operand.vmem [shape: bf16[32,96], index: 5, kind: input, shape index: {}]   ;;  %s1553_s7 = inlined_call_operand.vmem [shape: bf16[8,32], index: 7, kind: input, shape index: {}]   ;;  %s1554_s9 = inlined_call_operand.vmem [shape: f32[8,128], index: 9, kind: output, shape index: {}]  }
   0x1   :  { %v49_v0 = vld [vmem:[%s1545_s0 + $0x80] sm:$0xff]  ;;  %v50_v1 = vld [vmem:[%s1545_s0 + $0x88] sm:$0xff]  ;;  %1032 = vset.pattern.permute.xlu0 %v1156_v3  ;;  %1033 = vset.pattern.permute.xlu1 %v1156_v3  ;;  %v51_v6 = vld [vmem:[%s1545_s0 + $0x90] sm:$0xff] }
   0x2   :  { %v33_v2 = vld [vmem:[%s1545_s0] sm:$0xff]  ;;  %v73_v4 = vpack.c.bf16 %v50_v1, %v49_v0  ;;  %v34_v5 = vld [vmem:[%s1545_s0 + $0x8] sm:$0xff]  ;;  %v52_v7 = vld [vmem:[%s1545_s0 + $0x98] sm:$0xff]  ;;  %621 = vmatprep.subr.bf16.mxu1 %v1156_v3 }
   0x3   :  { %v65_v8 = vpack.c.bf16 %v34_v5, %v33_v2  ;;  %v74_v9 = vpack.c.bf16 %v52_v7, %v51_v6  ;;  %v35_v10 = vld [vmem:[%s1545_s0 + $0x10] sm:$0xff]  ;;  %v36_v11 = vld [vmem:[%s1545_s0 + $0x18] sm:$0xff]  ;;  %v53_v12 = vld [vmem:[%s1545_s0 + $0xa0] sm:$0xff] }
   0x4   :  { %918 = vmatprep.subr.bf16.mxu0 %v73_v4  ;;  %v54_v13 = vld [vmem:[%s1545_s0 + $0xa8] sm:$0xff]  ;;  %v66_v14 = vpack.c.bf16 %v36_v11, %v35_v10  ;;  %v37_v16 = vld [vmem:[%s1545_s0 + $0x20] sm:$0xff]  ;;  %v55_v18 = vld [vmem:[%s1545_s0 + $0xb0] sm:$0xff] }
   0x5   :  { %919 = vmatpush3.bf16.msra.mxu0 %v65_v8  ;;  %v75_v15 = vpack.c.bf16 %v54_v13, %v53_v12  ;;  %v38_v17 = vld [vmem:[%s1545_s0 + $0x28] sm:$0xff]  ;;  %v56_v19 = vld [vmem:[%s1545_s0 + $0xb8] sm:$0xff]  ;;  %v39_v22 = vld [vmem:[%s1545_s0 + $0x30] sm:$0xff] }
   0x6   :  { %920 = vmatprep.subr.bf16.mxu0 %v74_v9  ;;  %v67_v20 = vpack.c.bf16 %v38_v17, %v37_v16  ;;  %v76_v21 = vpack.c.bf16 %v56_v19, %v55_v18  ;;  %v40_v23 = vld [vmem:[%s1545_s0 + $0x38] sm:$0xff]  ;;  %v57_v24 = vld [vmem:[%s1545_s0 + $0xc0] sm:$0xff]  ;;  %v58_v25 = vld [vmem:[%s1545_s0 + $0xc8] sm:$0xff] }
   0x7   :  { %v1036_v26 = vld [vmem:[%s1546_s1 + $0x4] ss:$8 sps:$4 sm:$0xff]   ;;  %v68_v27 = vpack.c.bf16 %v40_v23, %v39_v22  ;;  %v77_v29 = vpack.c.bf16 %v58_v25, %v57_v24  ;;  %v59_v31 = vld [vmem:[%s1545_s0 + $0xd0] sm:$0xff]  ;;  %v60_v32 = vld [vmem:[%s1545_s0 + $0xd8] sm:$0xff] }
   0x8   :  { %v41_v28 = vld [vmem:[%s1545_s0 + $0x40] sm:$0xff]  ;;  %v42_v30 = vld [vmem:[%s1545_s0 + $0x48] sm:$0xff]  ;;  %353 = vmatprep.mubr.bf16.mxu0 %v1036_v26  ;;  %v43_v34 = vld [vmem:[%s1545_s0 + $0x50] sm:$0xff]  ;;  %v78_v35 = vpack.c.bf16 %v60_v32, %v59_v31 }
   0x9   :  { %921 = vmatpush3.bf16.msra.mxu0 %v66_v14  ;;  %v69_v33 = vpack.c.bf16 %v42_v30, %v41_v28  ;;  %v44_v36 = vld [vmem:[%s1545_s0 + $0x58] sm:$0xff]  ;;  %v61_v37 = vld [vmem:[%s1545_s0 + $0xe0] sm:$0xff]  ;;  %v62_v38 = vld [vmem:[%s1545_s0 + $0xe8] sm:$0xff] }
   0xa   :  { %922 = vmatprep.subr.bf16.mxu0 %v75_v15  ;;  %v70_v39 = vpack.c.bf16 %v44_v36, %v43_v34  ;;  %v45_v40 = vld [vmem:[%s1545_s0 + $0x60] sm:$0xff]  ;;  %v79_v42 = vpack.c.bf16 %v62_v38, %v61_v37  ;;  %v46_v43 = vld [vmem:[%s1545_s0 + $0x68] sm:$0xff]  ;;  %v63_v44 = vld [vmem:[%s1545_s0 + $0xf0] sm:$0xff] }
   0xb   :  { %v101_v41 = vld [vmem:[%s1547_s2] sm:$0xff]  ;;  %v64_v45 = vld [vmem:[%s1545_s0 + $0xf8] sm:$0xff]  ;;  %v102_v46 = vld [vmem:[%s1547_s2 + $0x8] sm:$0xff]  ;;  %v71_v48 = vpack.c.bf16 %v46_v43, %v45_v40 }
   0xc   :  { %123 = vperm.xlu0 %1032, %v101_v41   ;;  %v103_v47 = vld [vmem:[%s1547_s2 + $0x10] sm:$0xff]  ;;  %v104_v49 = vld [vmem:[%s1547_s2 + $0x18] sm:$0xff]  ;;  %v80_v50 = vpack.c.bf16 %v64_v45, %v63_v44  ;;  %v105_v53 = vld [vmem:[%s1547_s2 + $0x20] sm:$0xff] }
   0xd   :  { %923 = vmatpush3.bf16.msra.mxu0 %v67_v20  ;;  %133 = vperm.xlu1 %1033, %v103_v47   ;;  %v47_v51 = vld [vmem:[%s1545_s0 + $0x70] sm:$0xff]  ;;  %v48_v52 = vld [vmem:[%s1545_s0 + $0x78] sm:$0xff]  ;;  %v106_v55 = vld [vmem:[%s1547_s2 + $0x28] sm:$0xff] }
   0xe   :  { %924 = vmatprep.subr.bf16.mxu0 %v76_v21  ;;  %v72_v54 = vpack.c.bf16 %v48_v52, %v47_v51  ;;  %v107_v56 = vld [vmem:[%s1547_s2 + $0x30] sm:$0xff]  ;;  %v1034_v57 = vld [vmem:[%s1546_s1] ss:$8 sps:$4 sm:$0xff]   ;;  %v108_v59 = vld [vmem:[%s1547_s2 + $0x38] sm:$0xff] }
   0xf   :  { %v1037_v58 = vld [vmem:[%s1546_s1 + $0x14] ss:$8 sps:$4 sm:$0xff]   ;;  %v109_v60 = vld [vmem:[%s1547_s2 + $0x40] sm:$0xff]  ;;  %v110_v61 = vld [vmem:[%s1547_s2 + $0x48] sm:$0xff] }
  0x10   :  { %128 = vperm.xlu0 %1032, %v102_v46   ;;  %v111_v62 = vld [vmem:[%s1547_s2 + $0x50] sm:$0xff]  ;;  %v1040_v0 = vld [vmem:[%s1546_s1 + $0x24] ss:$8 sps:$4 sm:$0xff]   ;;  %v112_v1 = vld [vmem:[%s1547_s2 + $0x58] sm:$0xff] }
  0x11   :  { %925 = vmatpush3.bf16.msra.mxu0 %v68_v27  ;;  %138 = vperm.xlu1 %1033, %v104_v49   ;;  %v1039_v63 = vld [vmem:[%s1546_s1 + $0x10] ss:$8 sps:$4 sm:$0xff]   ;;  %v113_v2 = vld [vmem:[%s1547_s2 + $0x60] sm:$0xff]  ;;  %v114_v4 = vld [vmem:[%s1547_s2 + $0x68] sm:$0xff] }
  0x12   :  { %926 = vmatprep.subr.bf16.mxu0 %v77_v29  ;;  %v115_v5 = vld [vmem:[%s1547_s2 + $0x70] sm:$0xff]  ;;  %v1042_v6 = vld [vmem:[%s1546_s1 + $0x20] ss:$8 sps:$4 sm:$0xff]   ;;  %v116_v8 = vld [vmem:[%s1547_s2 + $0x78] sm:$0xff] }
  0x13   :  { %v1043_v7 = vld [vmem:[%s1546_s1 + $0x34] ss:$8 sps:$4 sm:$0xff]   ;;  %v117_v9 = vld [vmem:[%s1547_s2 + $0x80] sm:$0xff]  ;;  %v118_v10 = vld [vmem:[%s1547_s2 + $0x88] sm:$0xff] }
  0x14   :  { %143 = vperm.xlu0 %1032, %v105_v53   ;;  %v119_v11 = vld [vmem:[%s1547_s2 + $0x90] sm:$0xff]  ;;  %v1046_v13 = vld [vmem:[%s1546_s1 + $0x44] ss:$8 sps:$4 sm:$0xff]   ;;  %v120_v14 = vld [vmem:[%s1547_s2 + $0x98] sm:$0xff] }
  0x15   :  { %927 = vmatpush3.bf16.msra.mxu0 %v69_v33  ;;  %148 = vperm.xlu1 %1033, %v106_v55   ;;  %v1045_v12 = vld [vmem:[%s1546_s1 + $0x30] ss:$8 sps:$4 sm:$0xff]   ;;  %v476_v15 = vld [vmem:[%s1548_s4] sm:$0xff]  ;;  %v477_v16 = vld [vmem:[%s1548_s4 + $0x8] sm:$0xff] }
  0x16   :  { %928 = vmatprep.subr.bf16.mxu0 %v78_v35  ;;  %v478_v17 = vld [vmem:[%s1548_s4 + $0x10] sm:$0xff]  ;;  %v1048_v18 = vld [vmem:[%s1546_s1 + $0x40] ss:$8 sps:$4 sm:$0xff]   ;;  %v479_v20 = vld [vmem:[%s1548_s4 + $0x18] sm:$0xff] }
  0x17   :  { %v1049_v19 = vld [vmem:[%s1546_s1 + $0x54] ss:$8 sps:$4 sm:$0xff]   ;;  %v480_v21 = vld [vmem:[%s1548_s4 + $0x20] sm:$0xff]  ;;  %v481_v22 = vld [vmem:[%s1548_s4 + $0x28] sm:$0xff] }
  0x18   :  { %153 = vperm.xlu0 %1032, %v107_v56   ;;  %v482_v23 = vld [vmem:[%s1548_s4 + $0x30] sm:$0xff]  ;;  %v1052_v25 = vld [vmem:[%s1546_s1 + $0x64] ss:$8 sps:$4 sm:$0xff]   ;;  %v483_v26 = vld [vmem:[%s1548_s4 + $0x38] sm:$0xff] }
  0x19   :  { %929 = vmatpush3.bf16.msra.mxu0 %v70_v39  ;;  %158 = vperm.xlu1 %1033, %v108_v59   ;;  %v1051_v24 = vld [vmem:[%s1546_s1 + $0x50] ss:$8 sps:$4 sm:$0xff]   ;;  %v484_v27 = vld [vmem:[%s1548_s4 + $0x40] sm:$0xff]  ;;  %v485_v28 = vld [vmem:[%s1548_s4 + $0x48] sm:$0xff] }
  0x1a   :  { %930 = vmatprep.subr.bf16.mxu0 %v79_v42  ;;  %v486_v29 = vld [vmem:[%s1548_s4 + $0x50] sm:$0xff]  ;;  %v1054_v30 = vld [vmem:[%s1546_s1 + $0x60] ss:$8 sps:$4 sm:$0xff]   ;;  %v487_v32 = vld [vmem:[%s1548_s4 + $0x58] sm:$0xff] }
  0x1b   :  { %v1055_v31 = vld [vmem:[%s1546_s1 + $0x74] ss:$8 sps:$4 sm:$0xff]   ;;  %v724_v33 = vld [vmem:[%s1549_s6] sm:$0xff]  ;;  %v725_v34 = vld [vmem:[%s1549_s6 + $0x8] sm:$0xff] }
  0x1c   :  { %163 = vperm.xlu0 %1032, %v109_v60   ;;  %v726_v35 = vld [vmem:[%s1549_s6 + $0x10] sm:$0xff]  ;;  %v1058_v37 = vld [vmem:[%s1546_s1 + $0x84] ss:$8 sps:$4 sm:$0xff]   ;;  %v727_v38 = vld [vmem:[%s1549_s6 + $0x18] sm:$0xff] }
  0x1d   :  { %931 = vmatpush3.bf16.msra.mxu0 %v71_v48  ;;  %168 = vperm.xlu1 %1033, %v110_v61   ;;  %v1057_v36 = vld [vmem:[%s1546_s1 + $0x70] ss:$8 sps:$4 sm:$0xff]   ;;  %v821_v39 = vld [vmem:[%s1550_s8] sm:$0xff]  ;;  %v1061_v41 = vld [vmem:[%s1546_s1 + $0x94] ss:$8 sps:$4 sm:$0xff]  }
  0x1e   :  { %932 = vmatprep.subr.bf16.mxu0 %v80_v50  ;;  %v1060_v40 = vld [vmem:[%s1546_s1 + $0x80] ss:$8 sps:$4 sm:$0xff]   ;;  %v1063_v42 = vld [vmem:[%s1546_s1 + $0x90] ss:$8 sps:$4 sm:$0xff]   ;;  %v1066_v43 = vld [vmem:[%s1551_s3 + $0x4] ss:$8 sps:$4 sm:$0xff]  }
  0x1f   :  { %907 = vmatprep.mubr.msk.bf16.mxu1 %vm602_vm0, %v1066_v43 }
  0x20   :  { %173 = vperm.xlu0 %1032, %v111_v62  }
  0x21   :  { %933 = vmatpush3.bf16.msra.mxu0 %v72_v54  ;;  %178 = vperm.xlu1 %1033, %v112_v1  }
  0x24   :  { %354 = vmatmul.mubr.bf16.vlgmr.msra.gmra.mrb[0].mxu0 %v1034_v57  ;;  %183 = vperm.xlu0 %1032, %v113_v2  }
  0x25   :  { %361 = vmatprep.mubr.bf16.mxu0 %v1037_v58  ;;  %188 = vperm.xlu1 %1033, %v114_v4  }
  0x28   :  { %193 = vperm.xlu0 %1032, %v115_v5  }
  0x29   :  { %198 = vperm.xlu1 %1033, %v116_v8  }
  0x2c   :  { %362 = vmatmul.mubr.bf16.gmra.mrb[4].mxu0 %v1039_v63  ;;  %203 = vperm.xlu0 %1032, %v117_v9  }
  0x2d   :  { %369 = vmatprep.mubr.bf16.mxu0 %v1040_v0  ;;  %208 = vperm.xlu1 %1033, %v118_v10  }
  0x30   :  { %213 = vperm.xlu0 %1032, %v119_v11  }
  0x31   :  { %218 = vperm.xlu1 %1033, %v120_v14  }
  0x34   :  { %370 = vmatmul.mubr.bf16.gmra.mrb[8].mxu0 %v1042_v6  ;;  %490 = vperm.xlu0 %1032, %v476_v15  }
  0x35   :  { %377 = vmatprep.mubr.bf16.mxu0 %v1043_v7  ;;  %495 = vperm.xlu1 %1033, %v477_v16  }
  0x38   :  { %500 = vperm.xlu0 %1032, %v478_v17  }
  0x39   :  { %505 = vperm.xlu1 %1033, %v479_v20  }
  0x3c   :  { %378 = vmatmul.mubr.bf16.gmra.mrb[12].mxu0 %v1045_v12  ;;  %510 = vperm.xlu0 %1032, %v480_v21  }
  0x3d   :  { %385 = vmatprep.mubr.bf16.mxu0 %v1046_v13  ;;  %515 = vperm.xlu1 %1033, %v481_v22  }
  0x40   :  { %520 = vperm.xlu0 %1032, %v482_v23  }
  0x41   :  { %525 = vperm.xlu1 %1033, %v483_v26  }
  0x44   :  { %386 = vmatmul.mubr.bf16.gmra.mrb[16].mxu0 %v1048_v18  ;;  %530 = vperm.xlu0 %1032, %v484_v27  }
  0x45   :  { %393 = vmatprep.mubr.bf16.mxu0 %v1049_v19  ;;  %535 = vperm.xlu1 %1033, %v485_v28  }
  0x48   :  { %540 = vperm.xlu0 %1032, %v486_v29  }
  0x49   :  { %545 = vperm.xlu1 %1033, %v487_v32  }
  0x4c   :  { %394 = vmatmul.mubr.bf16.gmra.mrb[20].mxu0 %v1051_v24  ;;  %730 = vperm.xlu0 %1032, %v724_v33  }
  0x4d   :  { %401 = vmatprep.mubr.bf16.mxu0 %v1052_v25  ;;  %735 = vperm.xlu1 %1033, %v725_v34  }
  0x50   :  { %740 = vperm.xlu0 %1032, %v726_v35  }
  0x51   :  { %745 = vperm.xlu1 %1033, %v727_v38  }
  0x54   :  { %402 = vmatmul.mubr.bf16.gmra.mrb[24].mxu0 %v1054_v30  ;;  %824 = vperm.xlu0 %1032, %v821_v39  }
  0x55   :  { %409 = vmatprep.mubr.bf16.mxu0 %v1055_v31 }
  0x5c   :  { %410 = vmatmul.mubr.bf16.gmra.mrb[28].mxu0 %v1057_v36 }
  0x5d   :  { %417 = vmatprep.mubr.bf16.mxu0 %v1058_v37 }
  0x64   :  { %418 = vmatmul.mubr.bf16.gmra.mrb[32].mxu0 %v1060_v40 }
  0x65   :  { %425 = vmatprep.mubr.bf16.mxu0 %v1061_v41 }
  0x6c   :  { %426 = vmatmul.mubr.bf16.gmra.mrb[36].mxu0 %v1063_v42 }
  0x8b   :  { %v124_v44 = vpop.permute.xlu0 %123 }
  0x8c   :  { %v134_v54 = vpop.permute.xlu1 %133 }
  0x8f   :  { %v129_v52 = vpop.permute.xlu0 %128 }
  0x90   :  { %v139_v62 = vpop.permute.xlu1 %138 }
  0x93   :  { %v144_v7 = vpop.permute.xlu0 %143 }
  0x94   :  { %v149_v12 = vpop.permute.xlu1 %148 }
  0x97   :  { %v154_v20 = vpop.permute.xlu0 %153 }
  0x98   :  { %v159_v25 = vpop.permute.xlu1 %158 }
  0x9b   :  { %v164_v33 = vpop.permute.xlu0 %163 }
  0x9c   :  { %v169_v38 = vpop.permute.xlu1 %168 }
  0xf7   :  { %v934_v45 = vpop.f32.mrb[0].mxu0 }
  0xf8   :  { %v935_v46 = vpop.f32.mrb[1].mxu0 }
  0xf9   :  { %v936_v47 = vadd.f32 %v935_v46, %v934_v45  ;;  %v937_v48 = vpop.f32.mrb[2].mxu0  ;;  %v174_v46 = vpop.permute.xlu0 %173 }
  0xfa   :  { %v938_v49 = vpop.f32.mrb[3].mxu0 }
  0xfb   :  { %v356_v50 = vadd.f32 %v936_v47, %v124_v44  ;;  %v939_v51 = vadd.f32 %v938_v49, %v937_v48 }
  0xfd   :  { %v359_v53 = vadd.f32 %v939_v51, %v129_v52  ;;  %1084 = vtanh.f32 %v356_v50  ;;  %v179_v51 = vpop.permute.xlu1 %178 }
  0xff   :  { %1086 = vtanh.f32 %v359_v53  ;;  %v940_v55 = vpop.f32.mrb[4].mxu0 }
 0x100   :  { %v941_v56 = vpop.f32.mrb[5].mxu0 }
 0x101   :  { %v942_v57 = vadd.f32 %v941_v56, %v940_v55  ;;  %v943_v58 = vpop.f32.mrb[6].mxu0 }
 0x102   :  { %v944_v59 = vpop.f32.mrb[7].mxu0 }
 0x103   :  { %v364_v60 = vadd.f32 %v942_v57, %v134_v54  ;;  %v945_v61 = vadd.f32 %v944_v59, %v943_v58  ;;  %v184_v59 = vpop.permute.xlu0 %183 }
 0x105   :  { %v367_v63 = vadd.f32 %v945_v61, %v139_v62  ;;  %1088 = vtanh.f32 %v364_v60 }
 0x107   :  { %1090 = vtanh.f32 %v367_v63  ;;  %v946_v0 = vpop.f32.mrb[8].mxu0  ;;  %v1085_v1 = vpop.eup %1084 }
 0x108   :  { %v947_v2 = vpop.f32.mrb[9].mxu0 }
 0x109   :  { %v1087_v4 = vpop.eup %1086  ;;  %v948_v5 = vadd.f32 %v947_v2, %v946_v0  ;;  %v949_v6 = vpop.f32.mrb[10].mxu0 }
 0x10a   :  { %v950_v8 = vpop.f32.mrb[11].mxu0  ;;  %v454_v9 = vpack.c.bf16 %v1087_v4, %v1085_v1  ;;  %v189_v0 = vpop.permute.xlu1 %188 }
 0x10b   :  { %v372_v10 = vadd.f32 %v948_v5, %v144_v7  ;;  %v951_v11 = vadd.f32 %v950_v8, %v949_v6 }
 0x10c   :  { %622 = vmatpush1.bf16.msra.mxu1 %v454_v9  ;;  %v194_v9 = vpop.permute.xlu0 %193 }
 0x10d   :  { %v375_v13 = vadd.f32 %v951_v11, %v149_v12  ;;  %623 = vmatprep.subr.bf16.mxu1 %v1156_v3  ;;  %1092 = vtanh.f32 %v372_v10 }
 0x10f   :  { %1094 = vtanh.f32 %v375_v13  ;;  %v952_v14 = vpop.f32.mrb[12].mxu0  ;;  %v1089_v15 = vpop.eup %1088 }
 0x110   :  { %v953_v16 = vpop.f32.mrb[13].mxu0 }
 0x111   :  { %v1091_v17 = vpop.eup %1090  ;;  %v954_v18 = vadd.f32 %v953_v16, %v952_v14  ;;  %v955_v19 = vpop.f32.mrb[14].mxu0 }
 0x112   :  { %v956_v21 = vpop.f32.mrb[15].mxu0  ;;  %v455_v22 = vpack.c.bf16 %v1091_v17, %v1089_v15  ;;  %v199_v14 = vpop.permute.xlu1 %198 }
 0x113   :  { %v380_v23 = vadd.f32 %v954_v18, %v154_v20  ;;  %v957_v24 = vadd.f32 %v956_v21, %v955_v19 }
 0x114   :  { %624 = vmatpush1.bf16.msra.mxu1 %v455_v22  ;;  %v204_v22 = vpop.permute.xlu0 %203 }
 0x115   :  { %v383_v26 = vadd.f32 %v957_v24, %v159_v25  ;;  %625 = vmatprep.subr.bf16.mxu1 %v1156_v3  ;;  %1096 = vtanh.f32 %v380_v23 }
 0x117   :  { %1098 = vtanh.f32 %v383_v26  ;;  %v958_v27 = vpop.f32.mrb[16].mxu0  ;;  %v1093_v28 = vpop.eup %1092 }
 0x118   :  { %v959_v29 = vpop.f32.mrb[17].mxu0 }
 0x119   :  { %v1095_v30 = vpop.eup %1094  ;;  %v960_v31 = vadd.f32 %v959_v29, %v958_v27  ;;  %v961_v32 = vpop.f32.mrb[18].mxu0 }
 0x11a   :  { %v962_v34 = vpop.f32.mrb[19].mxu0  ;;  %v456_v35 = vpack.c.bf16 %v1095_v30, %v1093_v28  ;;  %v209_v27 = vpop.permute.xlu1 %208 }
 0x11b   :  { %v388_v36 = vadd.f32 %v960_v31, %v164_v33  ;;  %v963_v37 = vadd.f32 %v962_v34, %v961_v32 }
 0x11c   :  { %626 = vmatpush1.bf16.msra.mxu1 %v456_v35  ;;  %v214_v35 = vpop.permute.xlu0 %213 }
 0x11d   :  { %v391_v39 = vadd.f32 %v963_v37, %v169_v38  ;;  %627 = vmatprep.subr.bf16.mxu1 %v1156_v3  ;;  %1100 = vtanh.f32 %v388_v36 }
 0x11f   :  { %1102 = vtanh.f32 %v391_v39  ;;  %v964_v40 = vpop.f32.mrb[20].mxu0  ;;  %v1097_v41 = vpop.eup %1096 }
 0x120   :  { %v965_v42 = vpop.f32.mrb[21].mxu0 }
 0x121   :  { %v1099_v43 = vpop.eup %1098  ;;  %v966_v44 = vadd.f32 %v965_v42, %v964_v40  ;;  %v967_v45 = vpop.f32.mrb[22].mxu0 }
 0x122   :  { %v968_v47 = vpop.f32.mrb[23].mxu0  ;;  %v457_v48 = vpack.c.bf16 %v1099_v43, %v1097_v41  ;;  %v219_v40 = vpop.permute.xlu1 %218 }
 0x123   :  { %v396_v49 = vadd.f32 %v966_v44, %v174_v46  ;;  %v969_v50 = vadd.f32 %v968_v47, %v967_v45 }
 0x124   :  { %628 = vmatpush1.bf16.msra.mxu1 %v457_v48  ;;  %v1064_v48 = vld [vmem:[%s1551_s3] ss:$8 sps:$4 sm:$0xff]  }
 0x125   :  { %v399_v52 = vadd.f32 %v969_v50, %v179_v51  ;;  %629 = vmatprep.subr.bf16.mxu1 %v1156_v3  ;;  %1104 = vtanh.f32 %v396_v49  ;;  %v1067_v49 = vld [vmem:[%s1551_s3 + $0x14] ss:$8 sps:$4 sm:$0xff]   ;;  %v1069_v50 = vld [vmem:[%s1551_s3 + $0x10] ss:$8 sps:$4 sm:$0xff]   ;;  %v1072_v51 = vld [vmem:[%s1551_s3 + $0x20] ss:$8 sps:$4 sm:$0xff]  }
 0x127   :  { %1106 = vtanh.f32 %v399_v52  ;;  %v970_v53 = vpop.f32.mrb[24].mxu0  ;;  %v1101_v54 = vpop.eup %1100  ;;  %v1073_v52 = vld [vmem:[%s1551_s3 + $0x34] ss:$8 sps:$4 sm:$0xff]  }
 0x128   :  { %v971_v55 = vpop.f32.mrb[25].mxu0 }
 0x129   :  { %v1103_v56 = vpop.eup %1102  ;;  %v972_v57 = vadd.f32 %v971_v55, %v970_v53  ;;  %v973_v58 = vpop.f32.mrb[26].mxu0  ;;  %v1075_v53 = vld [vmem:[%s1551_s3 + $0x30] ss:$8 sps:$4 sm:$0xff]   ;;  %v1078_v55 = vld [vmem:[%s1551_s3 + $0x40] ss:$8 sps:$4 sm:$0xff]  }
 0x12a   :  { %v974_v60 = vpop.f32.mrb[27].mxu0  ;;  %v458_v61 = vpack.c.bf16 %v1103_v56, %v1101_v54  ;;  %v1076_v54 = vld [vmem:[%s1551_s3 + $0x44] ss:$8 sps:$4 sm:$0xff]   ;;  %v1079_v56 = vld [vmem:[%s1551_s3 + $0x54] ss:$8 sps:$4 sm:$0xff]  }
 0x12b   :  { %v404_v62 = vadd.f32 %v972_v57, %v184_v59  ;;  %v975_v63 = vadd.f32 %v974_v60, %v973_v58  ;;  %v1081_v57 = vld [vmem:[%s1551_s3 + $0x50] ss:$8 sps:$4 sm:$0xff]   ;;  %v1082_v58 = vld [vmem:[%s1552_s5] sm:$0xff]   ;;  %v491_v59 = vpop.permute.xlu0 %490 }
 0x12c   :  { %630 = vmatpush1.bf16.msra.mxu1 %v458_v61 }
 0x12d   :  { %v407_v1 = vadd.f32 %v975_v63, %v189_v0  ;;  %631 = vmatprep.subr.bf16.mxu1 %v1156_v3  ;;  %1108 = vtanh.f32 %v404_v62  ;;  %v496_v63 = vpop.permute.xlu1 %495 }
 0x12f   :  { %1110 = vtanh.f32 %v407_v1  ;;  %v976_v2 = vpop.f32.mrb[28].mxu0  ;;  %v1105_v4 = vpop.eup %1104 }
 0x130   :  { %v977_v5 = vpop.f32.mrb[29].mxu0 }
 0x131   :  { %v1107_v6 = vpop.eup %1106  ;;  %v978_v7 = vadd.f32 %v977_v5, %v976_v2  ;;  %v979_v8 = vpop.f32.mrb[30].mxu0 }
 0x132   :  { %v980_v10 = vpop.f32.mrb[31].mxu0  ;;  %v459_v11 = vpack.c.bf16 %v1107_v6, %v1105_v4  ;;  %v501_v4 = vpop.permute.xlu0 %500 }
 0x133   :  { %v412_v12 = vadd.f32 %v978_v7, %v194_v9  ;;  %v981_v13 = vadd.f32 %v980_v10, %v979_v8  ;;  %v506_v8 = vpop.permute.xlu1 %505 }
 0x134   :  { %632 = vmatpush1.bf16.msra.mxu1 %v459_v11 }
 0x135   :  { %v415_v15 = vadd.f32 %v981_v13, %v199_v14  ;;  %633 = vmatprep.subr.bf16.mxu1 %v1156_v3  ;;  %1112 = vtanh.f32 %v412_v12 }
 0x136   :  { %v511_v14 = vpop.permute.xlu0 %510 }
 0x137   :  { %1114 = vtanh.f32 %v415_v15  ;;  %v982_v16 = vpop.f32.mrb[32].mxu0  ;;  %v1109_v17 = vpop.eup %1108 }
 0x138   :  { %v983_v18 = vpop.f32.mrb[33].mxu0 }
 0x139   :  { %v1111_v19 = vpop.eup %1110  ;;  %v984_v20 = vadd.f32 %v983_v18, %v982_v16  ;;  %v985_v21 = vpop.f32.mrb[34].mxu0 }
 0x13a   :  { %v986_v23 = vpop.f32.mrb[35].mxu0  ;;  %v460_v24 = vpack.c.bf16 %v1111_v19, %v1109_v17  ;;  %v516_v19 = vpop.permute.xlu1 %515 }
 0x13b   :  { %v420_v25 = vadd.f32 %v984_v20, %v204_v22  ;;  %v987_v26 = vadd.f32 %v986_v23, %v985_v21 }
 0x13c   :  { %634 = vmatpush1.bf16.msra.mxu1 %v460_v24 }
 0x13d   :  { %v423_v28 = vadd.f32 %v987_v26, %v209_v27  ;;  %635 = vmatprep.subr.bf16.mxu1 %v1156_v3  ;;  %1116 = vtanh.f32 %v420_v25  ;;  %v521_v25 = vpop.permute.xlu0 %520 }
 0x13f   :  { %1118 = vtanh.f32 %v423_v28  ;;  %v988_v29 = vpop.f32.mrb[36].mxu0  ;;  %v1113_v30 = vpop.eup %1112 }
 0x140   :  { %v989_v31 = vpop.f32.mrb[37].mxu0 }
 0x141   :  { %v1115_v32 = vpop.eup %1114  ;;  %v990_v33 = vadd.f32 %v989_v31, %v988_v29  ;;  %v991_v34 = vpop.f32.mrb[38].mxu0 }
 0x142   :  { %v992_v36 = vpop.f32.mrb[39].mxu0  ;;  %v461_v37 = vpack.c.bf16 %v1115_v32, %v1113_v30  ;;  %v526_v30 = vpop.permute.xlu1 %525 }
 0x143   :  { %v428_v38 = vadd.f32 %v990_v33, %v214_v35  ;;  %v993_v39 = vadd.f32 %v992_v36, %v991_v34  ;;  %v531_v36 = vpop.permute.xlu0 %530 }
 0x144   :  { %636 = vmatpush1.bf16.msra.mxu1 %v461_v37 }
 0x145   :  { %v431_v41 = vadd.f32 %v993_v39, %v219_v40  ;;  %637 = vmatprep.subr.bf16.mxu1 %v1156_v3  ;;  %1120 = vtanh.f32 %v428_v38 }
 0x147   :  { %1122 = vtanh.f32 %v431_v41  ;;  %v1117_v42 = vpop.eup %1116  ;;  %v536_v41 = vpop.permute.xlu1 %535 }
 0x149   :  { %v1119_v43 = vpop.eup %1118 }
 0x14a   :  { %v462_v44 = vpack.c.bf16 %v1119_v43, %v1117_v42 }
 0x14c   :  { %638 = vmatpush1.bf16.msra.mxu1 %v462_v44 }
 0x14d   :  { %639 = vmatprep.subr.bf16.mxu1 %v1156_v3  ;;  %v1070_v3 = vld [vmem:[%s1551_s3 + $0x24] ss:$8 sps:$4 sm:$0xff]  }
 0x14f   :  { %v1121_v45 = vpop.eup %1120 }
 0x151   :  { %v1123_v46 = vpop.eup %1122 }
 0x152   :  { %v463_v47 = vpack.c.bf16 %v1123_v46, %v1121_v45 }
 0x154   :  { %640 = vmatpush1.bf16.msra.mxu1 %v463_v47  ;;  %v541_v47 = vpop.permute.xlu0 %540 }
 0x157   :  { %654 = vmatmul.mubr.bf16.vlgmr.msra.gmra.mrb[0].mxu1 %v1064_v48 }
 0x158   :  { %908 = vmatprep.mubr.msk.bf16.mxu1 %vm602_vm0, %v1067_v49 }
 0x15f   :  { %662 = vmatmul.mubr.bf16.gmra.mrb[4].mxu1 %v1069_v50 }
 0x160   :  { %909 = vmatprep.mubr.msk.bf16.mxu1 %vm602_vm0, %v1070_v3 }
 0x167   :  { %670 = vmatmul.mubr.bf16.gmra.mrb[8].mxu1 %v1072_v51  ;;  %v546_v51 = vpop.permute.xlu1 %545 }
 0x168   :  { %910 = vmatprep.mubr.msk.bf16.mxu1 %vm602_vm0, %v1073_v52 }
 0x16f   :  { %678 = vmatmul.mubr.bf16.gmra.mrb[12].mxu1 %v1075_v53 }
 0x170   :  { %911 = vmatprep.mubr.msk.bf16.mxu1 %vm602_vm0, %v1076_v54 }
 0x177   :  { %686 = vmatmul.mubr.bf16.gmra.mrb[16].mxu1 %v1078_v55 }
 0x178   :  { %912 = vmatprep.mubr.msk.bf16.mxu1 %vm602_vm0, %v1079_v56 }
 0x17f   :  { %694 = vmatmul.mubr.bf16.gmra.mrb[20].mxu1 %v1081_v57 }
 0x180   :  { %1017 = vmatprep.mubr.msk.bf16.mxu1 %vm758_vm1, %v1082_v58 }
 0x22a   :  { %v655_v60 = vpop.f32.mrb[0].mxu1 }
 0x22b   :  { %v656_v61 = vadd.f32 %v655_v60, %v491_v59  ;;  %v657_v62 = vpop.f32.mrb[1].mxu1 }
 0x22c   :  { %v658_v0 = vpop.f32.mrb[2].mxu1  ;;  %v1157_v62 = vmov 0.0  }
 0x22d   :  { %v659_v1 = vadd.f32 %v658_v0, %v496_v63  ;;  %v660_v2 = vpop.f32.mrb[3].mxu1  ;;  %1124 = vtanh.f32 %v656_v61  ;;  %v1083_v61 = vld [vmem:[%s1552_s5 + $0x8] sm:$0xff]   ;;  %v731_v63 = vpop.permute.xlu0 %730 }
 0x22e   :  { %v736_v0 = vpop.permute.xlu1 %735 }
 0x22f   :  { %1126 = vtanh.f32 %v659_v1 }
 0x231   :  { %v741_v1 = vpop.permute.xlu0 %740 }
 0x232   :  { %v663_v5 = vpop.f32.mrb[4].mxu1 }
 0x233   :  { %v664_v6 = vadd.f32 %v663_v5, %v501_v4  ;;  %v665_v7 = vpop.f32.mrb[5].mxu1 }
 0x234   :  { %v666_v9 = vpop.f32.mrb[6].mxu1 }
 0x235   :  { %v667_v10 = vadd.f32 %v666_v9, %v506_v8  ;;  %v668_v11 = vpop.f32.mrb[7].mxu1  ;;  %1128 = vtanh.f32 %v664_v6  ;;  %v746_v6 = vpop.permute.xlu1 %745 }
 0x237   :  { %1130 = vtanh.f32 %v667_v10  ;;  %v1125_v12 = vpop.eup %1124 }
 0x239   :  { %v1127_v13 = vpop.eup %1126 }
 0x23a   :  { %v671_v15 = vpop.f32.mrb[8].mxu1  ;;  %v714_v16 = vpack.c.bf16 %v1127_v13, %v1125_v12 }
 0x23b   :  { %v672_v17 = vadd.f32 %v671_v15, %v511_v14  ;;  %v673_v18 = vpop.f32.mrb[9].mxu1 }
 0x23c   :  { %v674_v20 = vpop.f32.mrb[10].mxu1  ;;  %1005 = vmatprep.subr.bf16.mxu1 %v714_v16  ;;  %v820_v18 = vld [vmem:[%s1553_s7] sm:$0xf] }
 0x23d   :  { %v675_v21 = vadd.f32 %v674_v20, %v516_v19  ;;  %v676_v22 = vpop.f32.mrb[11].mxu1  ;;  %1006 = vmatpush3.bf16.msra.mxu1 %v714_v16  ;;  %1132 = vtanh.f32 %v672_v17  ;;  %v825_v19 = vpop.permute.xlu0 %824 }
 0x23f   :  { %1134 = vtanh.f32 %v675_v21  ;;  %v1129_v23 = vpop.eup %1128 }
 0x241   :  { %v1131_v24 = vpop.eup %1130 }
 0x242   :  { %v679_v26 = vpop.f32.mrb[12].mxu1  ;;  %v715_v27 = vpack.c.bf16 %v1131_v24, %v1129_v23 }
 0x243   :  { %v680_v28 = vadd.f32 %v679_v26, %v521_v25  ;;  %v681_v29 = vpop.f32.mrb[13].mxu1 }
 0x244   :  { %v682_v31 = vpop.f32.mrb[14].mxu1  ;;  %1007 = vmatprep.subr.bf16.mxu1 %v715_v27 }
 0x245   :  { %v683_v32 = vadd.f32 %v682_v31, %v526_v30  ;;  %v684_v33 = vpop.f32.mrb[15].mxu1  ;;  %1008 = vmatpush3.bf16.msra.mxu1 %v715_v27  ;;  %1136 = vtanh.f32 %v680_v28 }
 0x247   :  { %1138 = vtanh.f32 %v683_v32  ;;  %v1133_v34 = vpop.eup %1132 }
 0x249   :  { %v1135_v35 = vpop.eup %1134 }
 0x24a   :  { %v687_v37 = vpop.f32.mrb[16].mxu1  ;;  %v716_v38 = vpack.c.bf16 %v1135_v35, %v1133_v34 }
 0x24b   :  { %v688_v39 = vadd.f32 %v687_v37, %v531_v36  ;;  %v689_v40 = vpop.f32.mrb[17].mxu1 }
 0x24c   :  { %v690_v42 = vpop.f32.mrb[18].mxu1  ;;  %1009 = vmatprep.subr.bf16.mxu1 %v716_v38 }
 0x24d   :  { %v691_v43 = vadd.f32 %v690_v42, %v536_v41  ;;  %v692_v44 = vpop.f32.mrb[19].mxu1  ;;  %1010 = vmatpush3.bf16.msra.mxu1 %v716_v38  ;;  %1140 = vtanh.f32 %v688_v39 }
 0x24f   :  { %1142 = vtanh.f32 %v691_v43  ;;  %v1137_v45 = vpop.eup %1136 }
 0x251   :  { %v1139_v46 = vpop.eup %1138 }
 0x252   :  { %v695_v48 = vpop.f32.mrb[20].mxu1  ;;  %v717_v49 = vpack.c.bf16 %v1139_v46, %v1137_v45 }
 0x253   :  { %v696_v50 = vadd.f32 %v695_v48, %v541_v47  ;;  %v697_v3 = vpop.f32.mrb[21].mxu1 }
 0x254   :  { %v698_v52 = vpop.f32.mrb[22].mxu1  ;;  %1011 = vmatprep.subr.bf16.mxu1 %v717_v49 }
 0x255   :  { %v699_v53 = vadd.f32 %v698_v52, %v546_v51  ;;  %v700_v54 = vpop.f32.mrb[23].mxu1  ;;  %1012 = vmatpush3.bf16.msra.mxu1 %v717_v49  ;;  %1144 = vtanh.f32 %v696_v50 }
 0x257   :  { %1146 = vtanh.f32 %v699_v53  ;;  %v1141_v55 = vpop.eup %1140 }
 0x259   :  { %v1143_v56 = vpop.eup %1142 }
 0x25a   :  { %v718_v57 = vpack.c.bf16 %v1143_v56, %v1141_v55 }
 0x25c   :  { %1013 = vmatprep.subr.bf16.mxu1 %v718_v57 }
 0x25d   :  { %1014 = vmatpush3.bf16.msra.mxu1 %v718_v57 }
 0x25f   :  { %v1145_v58 = vpop.eup %1144 }
 0x261   :  { %v1147_v59 = vpop.eup %1146 }
 0x262   :  { %v719_v60 = vpack.c.bf16 %v1147_v59, %v1145_v58 }
 0x264   :  { %1015 = vmatprep.subr.bf16.mxu1 %v719_v60 }
 0x265   :  { %1016 = vmatpush3.bf16.msra.mxu1 %v719_v60 }
 0x266   :  { %1021 = vmatprep.subr.bf16.mxu1 %v1157_v62 }
 0x268   :  { %1018 = vmatmul.mubr.msk.bf16.vlgmr.msra.gmra.mrb[24].mxu1 %vm758_vm1, %v1083_v61 }
 0x269   :  { %1025 = vmatprep.mubr.msk.bf16.mxu1 %vm1158_vm2, %v1157_v62 }
 0x33b   :  { %v1019_v2 = vpop.f32.mrb[24].mxu1 }
 0x33c   :  { %v808_v4 = vadd.f32 %v1019_v2, %v741_v1  ;;  %v799_v5 = vpop.f32.mrb[25].mxu1 }
 0x33d   :  { %v800_v7 = vadd.f32 %v799_v5, %v731_v63  ;;  %v1020_v8 = vpop.f32.mrb[26].mxu1 }
 0x33e   :  { %1148 = vtanh.f32 %v808_v4  ;;  %v811_v9 = vadd.f32 %v1020_v8, %v746_v6  ;;  %v802_v10 = vpop.f32.mrb[27].mxu1 }
 0x33f   :  { %1150 = vtanh.f32 %v800_v7  ;;  %v803_v11 = vadd.f32 %v802_v10, %v736_v0 }
 0x340   :  { %1152 = vtanh.f32 %v811_v9 }
 0x341   :  { %1154 = vtanh.f32 %v803_v11 }
 0x348   :  { %v1149_v12 = vpop.eup %1148 }
 0x349   :  { %v1151_v13 = vpop.eup %1150 }
 0x34a   :  { %v1153_v14 = vpop.eup %1152 }
 0x34b   :  { %v1155_v15 = vpop.eup %1154  ;;  %v819_v16 = vpack.c.bf16 %v1153_v14, %v1149_v12 }
 0x34c   :  { %v818_v17 = vpack.c.bf16 %v1155_v15, %v1151_v13 }
 0x34e   :  { %1022 = vmatpush3.bf16.msra.mxu1 %v818_v17 }
 0x34f   :  { %1023 = vmatprep.subr.bf16.mxu1 %v1157_v62 }
 0x352   :  { %1024 = vmatpush3.bf16.msra.mxu1 %v819_v16 }
 0x355   :  { %1026 = vmatmul.mubr.msk.bf16.vlgmr.msra.gmra.mrb[28].mxu1 %vm602_vm0, %v820_v18 }
 0x428   :  { %v864_v20 = vpop.f32.mrb[28].mxu1 }
 0x429   :  { %v865_v21 = vadd.f32 %v864_v20, %v825_v19  ;;  %v1027_v22 = vpop.f32.mrb[29].mxu1 }
 0x42a   :  { %v867_v23 = vpop.f32.mrb[30].mxu1 }
 0x42b   :  { %870 = vst [vmem:[%s1554_s9] sm:$0xff] %v865_v21  ;;  %v1028_v24 = vpop.f32.mrb[31].mxu1 }

</bundles_post_ra>
